<compile_context>
chip_gen: v7x
topology: tpu7x:2x2x1
jax: 0.10.0
libtpu: 0.0.40
codegen_flags: <defaults>
</compile_context>

<pallas_src>
import functools
import math

import jax
import jax.numpy as jnp
from jax.experimental import pallas as pl
from jax.experimental.pallas import tpu as pltpu

_SQRT2 = math.sqrt(2.0)


def _round_up(x, m):
    return (x + m - 1) // m * m


def _epilogue(acc_f32, bias_row, *, w_mul, activation):
    # Fold the equalized-lr weight scale into the f32 accumulator (cheaper than
    # rescaling the weight tile and keeps the scale in f32), add pre-scaled bias.
    y = acc_f32 * jnp.float32(w_mul) + bias_row
    if activation == "lrelu":
        # fused_leaky_relu: leaky_relu(y + b, 0.2) * sqrt(2)
        y = jnp.where(y >= 0, y, 0.2 * y) * jnp.float32(_SQRT2)
    return y


def _kernel_single_k(x_ref, w_ref, b_ref, o_ref, *, w_mul, activation):
    # Full-K panel in one shot: no accumulator scratch, no grid revisits.
    acc = jnp.dot(x_ref[...], w_ref[...], preferred_element_type=jnp.float32)
    o_ref[...] = _epilogue(acc, b_ref[...], w_mul=w_mul,
                           activation=activation).astype(o_ref.dtype)


def _kernel_multi_k(x_ref, w_ref, b_ref, o_ref, acc_ref, *, w_mul, activation):
    k = pl.program_id(2)

    @pl.when(k == 0)
    def _():
        acc_ref[...] = jnp.zeros_like(acc_ref)

    acc_ref[...] += jnp.dot(x_ref[...], w_ref[...],
                            preferred_element_type=jnp.float32)

    @pl.when(k == pl.num_programs(2) - 1)
    def _():
        o_ref[...] = _epilogue(acc_ref[...], b_ref[...], w_mul=w_mul,
                               activation=activation).astype(o_ref.dtype)


def plan_equalized_linear(out_dim, in_dim, *, tn=512, tk=512,
                          compute_dtype=jnp.bfloat16):
    """One-time tiling plan for a layer of shape (out_dim, in_dim)."""
    N_r = _round_up(out_dim, 128)
    K_r = _round_up(in_dim, 128)

    tn = min(tn, N_r)
    # v7x megacore: if N would be a single tile (and M often is, for small
    # batches), split N into >=2 parallel tiles so both TensorCores get work.
    if tn == N_r and N_r >= 256:
        tn = _round_up(N_r // 2, 128)
    N_p = _round_up(N_r, tn)

    # Collapse the K grid to one step whenever the full-K panels are small
    # (StyleGAN2 dims easily qualify): removes per-step overhead + acc traffic.
    if K_r <= 2048:
        tk = K_r
    else:
        tk = min(tk, K_r)
    K_p = _round_up(K_r, tk)

    return dict(N=out_dim, K=in_dim, N_p=N_p, K_p=K_p, tn=tn, tk=tk,
                compute_dtype=compute_dtype)


def prepare_equalized_linear_params(weight, bias, b_mul, plan):
    """One-time parameter transform (do NOT redo per forward call):
    transpose+pad+cast weight to (K_p, N_p) bf16; pre-scale+pad bias (f32)."""
    N, K = plan["N"], plan["K"]
    assert weight.shape == (N, K)
    w_t = weight.T                                               # (K, N)
    w_p = jnp.pad(w_t, ((0, plan["K_p"] - K), (0, plan["N_p"] - N)))
    w_p = w_p.astype(plan["compute_dtype"])
    b = (bias.astype(jnp.float32) * jnp.float32(b_mul)).reshape(1, N)
    b_p = jnp.pad(b, ((0, 0), (0, plan["N_p"] - N)))
    return w_p, b_p


def equalized_linear(x, w_prepared, b_prepared, *, w_mul, activation, plan,
                     tm=512):
    """Forward: x (M, K) f32 -> (M, N) f32, using prepared (padded bf16) params."""
    M, K = x.shape
    assert K == plan["K"]
    N, N_p, K_p = plan["N"], plan["N_p"], plan["K_p"]
    tn, tk = plan["tn"], plan["tk"]
    cdt = plan["compute_dtype"]

    # Grow tm first for large batches: weight HBM traffic scales with M_p/tm.
    M_r = _round_up(M, 8)
    if M_r >= 1024:
        tm = max(tm, 1024)
    tm = min(tm, M_r)
    M_p = _round_up(M_r, tm)

    # Zero K-pad has no effect on the dot; cast activations to bf16 for the MXU.
    x_p = jnp.pad(x, ((0, M_p - M), (0, K_p - K))).astype(cdt)

    gm, gn, k_steps = M_p // tm, N_p // tn, K_p // tk

    in_b = jnp.dtype(cdt).itemsize
    out_b = jnp.dtype(x.dtype).itemsize
    # Actual re-streaming: x fetched once per N tile, weight once per M tile.
    bytes_accessed = (in_b * M_p * K_p * gn
                      + in_b * K_p * N_p * gm
                      + out_b * M_p * N_p
                      + 4 * N_p * gm * gn)
    # Explicit VMEM budget: double-buffered inputs + output, f32 acc if multi-K.
    vmem_need = (2 * (tm * tk * in_b + tk * tn * in_b + tn * 4)
                 + 2 * tm * tn * out_b
                 + (tm * tn * 4 if k_steps > 1 else 0))
    vmem_limit = int(min(max(vmem_need + (4 << 20), 32 << 20), 60 << 20))

    if k_steps == 1:
        kernel = functools.partial(_kernel_single_k, w_mul=float(w_mul),
                                   activation=activation)
        grid_spec = pltpu.PrefetchScalarGridSpec(
            num_scalar_prefetch=0,
            grid=(gm, gn),
            in_specs=[
                pl.BlockSpec((tm, tk), lambda i, j: (i, 0)),   # x tile (full K)
                pl.BlockSpec((tk, tn), lambda i, j: (0, j)),   # weight (K, N) tile
                pl.BlockSpec((1, tn), lambda i, j: (0, j)),    # pre-scaled bias
            ],
            out_specs=pl.BlockSpec((tm, tn), lambda i, j: (i, j)),
        )
        dim_sem = ("parallel", "parallel")
    else:
        kernel = functools.partial(_kernel_multi_k, w_mul=float(w_mul),
                                   activation=activation)
        grid_spec = pltpu.PrefetchScalarGridSpec(
            num_scalar_prefetch=0,
            grid=(gm, gn, k_steps),
            in_specs=[
                pl.BlockSpec((tm, tk), lambda i, j, k: (i, k)),
                pl.BlockSpec((tk, tn), lambda i, j, k: (k, j)),
                pl.BlockSpec((1, tn), lambda i, j, k: (0, j)),
            ],
            out_specs=pl.BlockSpec((tm, tn), lambda i, j, k: (i, j)),
            scratch_shapes=[pltpu.VMEM((tm, tn), jnp.float32)],
        )
        dim_sem = ("parallel", "parallel", "arbitrary")

    out = pl.pallas_call(
        kernel,
        out_shape=jax.ShapeDtypeStruct((M_p, N_p), x.dtype),
        grid_spec=grid_spec,
        compiler_params=pltpu.CompilerParams(
            dimension_semantics=dim_sem,
            vmem_limit_bytes=vmem_limit,
        ),
        cost_estimate=pl.CostEstimate(
            flops=2 * M_p * N_p * K_p,
            transcendentals=0,
            bytes_accessed=int(bytes_accessed),
        ),
    )(x_p, w_prepared, b_prepared)

    return out[:M, :N]


def make_equalized_linear_params(key, in_dim, out_dim, *, bias_init=0.0,
                                 gain=1.0, use_wscale=True, lrmul=1.0):
    """Deterministic parameter init mirroring EqualizedLinear.__init__."""
    he_std = gain * in_dim ** (-0.5)
    if use_wscale:
        init_std = 1.0 / lrmul
        w_mul = he_std * lrmul
    else:
        init_std = he_std / lrmul
        w_mul = lrmul
    weight = jax.random.normal(key, (out_dim, in_dim), dtype=jnp.float32) * init_std
    bias = jnp.full((out_dim,), bias_init, dtype=jnp.float32)
    b_mul = lrmul
    return weight, bias, w_mul, b_mul


if __name__ == "__main__":
    key = jax.random.PRNGKey(0)
    k_x, k_w = jax.random.split(key)

    batch, in_dim, out_dim = 8, 32, 64
    x = jax.random.normal(k_x, (batch, in_dim), dtype=jnp.float32)

    weight, bias, w_mul, b_mul = make_equalized_linear_params(
        k_w, in_dim, out_dim, bias_init=0.1, gain=1.0, use_wscale=True, lrmul=1.0
    )

    # One-time plan + parameter preparation (transpose/pad/cast hoisted here).
    plan = plan_equalized_linear(out_dim, in_dim)
    w_p, b_p = prepare_equalized_linear_params(weight, bias, b_mul, plan)

    # activation=None path (module default)
    out = equalized_linear(x, w_p, b_p, w_mul=w_mul, activation=None, plan=plan)
    out = jax.block_until_ready(out)

    # 'lrelu' path (fused_leaky_relu)
    out_lrelu = equalized_linear(x, w_p, b_p, w_mul=w_mul, activation="lrelu",
                                 plan=plan)
    out_lrelu = jax.block_until_ready(out_lrelu)

    # Pure-JAX reference mirroring the kernel's bf16 MXU inputs / f32 accumulation.
    x_bf = x.astype(jnp.bfloat16).astype(jnp.float32)
    w_bf = weight.T.astype(jnp.bfloat16).astype(jnp.float32)
    ref = (x_bf @ w_bf) * w_mul + bias * b_mul
    ref_lrelu = jnp.where(ref >= 0, ref, 0.2 * ref) * math.sqrt(2.0)

    assert jnp.allclose(out, ref, atol=1e-3, rtol=1e-3), \
        float(jnp.max(jnp.abs(out - ref)))
    assert jnp.allclose(out_lrelu, ref_lrelu, atol=1e-3, rtol=1e-3), \
        float(jnp.max(jnp.abs(out_lrelu - ref_lrelu)))

    print("KERNEL_OK")
</pallas_src>

<mosaic_0001>
module attributes {stable_mosaic.version = 11 : i64} {
  func.func @_kernel_single_k(%arg0: i32, %arg1: i32, %arg2: memref<8x128xbf16, #tpu.memory_space<vmem>>, %arg3: memref<128x128xbf16, #tpu.memory_space<vmem>>, %arg4: memref<1x128xf32, #tpu.memory_space<vmem>>, %arg5: memref<8x128xf32, #tpu.memory_space<vmem>>) attributes {dimension_semantics = [#tpu.dimension_semantics<parallel>, #tpu.dimension_semantics<parallel>], iteration_bounds = array<i64: 1, 1>, scalar_prefetch = 0 : i64, scratch_operands = 0 : i64, tpu.core_type = #tpu.core_type<tc>, window_params = [{transform_indices = @transform_0, window_bounds = array<i64: 8, 128>}, {transform_indices = @transform_1, window_bounds = array<i64: 128, 128>}, {transform_indices = @transform_2, window_bounds = array<i64: 1, 128>}, {transform_indices = @transform_3, window_bounds = array<i64: 8, 128>}]} {
    %c0 = arith.constant 0 : index
    %c0_0 = arith.constant 0 : index
    %0 = vector.load %arg2[%c0, %c0_0] : memref<8x128xbf16, #tpu.memory_space<vmem>>, vector<8x128xbf16>
    %c0_1 = arith.constant 0 : index
    %c0_2 = arith.constant 0 : index
    %1 = vector.load %arg3[%c0_1, %c0_2] : memref<128x128xbf16, #tpu.memory_space<vmem>>, vector<128x128xbf16>
    %cst = arith.constant dense<0.000000e+00> : vector<8x128xf32>
    %2 = tpu.matmul %0, %1, %cst {dimension_numbers = #tpu.dot_dimension_numbers<[1], [0], [0], [1], [0, 0, 1, 1], [], []>} : vector<8x128xbf16>, vector<128x128xbf16>, vector<8x128xf32> -> vector<8x128xf32>
    %c0_3 = arith.constant 0 : index
    %c0_4 = arith.constant 0 : index
    %3 = vector.load %arg4[%c0_3, %c0_4] : memref<1x128xf32, #tpu.memory_space<vmem>>, vector<1x128xf32>
    %cst_5 = arith.constant 0.176776692 : f32
    %4 = vector.broadcast %cst_5 : f32 to vector<8x128xf32>
    %5 = arith.mulf %2, %4 : vector<8x128xf32>
    %6 = vector.broadcast %3 : vector<1x128xf32> to vector<8x128xf32>
    %7 = arith.addf %5, %6 : vector<8x128xf32>
    %c0_6 = arith.constant 0 : index
    %c0_7 = arith.constant 0 : index
    %8 = vector.load %arg5[%c0_6, %c0_7] : memref<8x128xf32, #tpu.memory_space<vmem>>, vector<8x128xf32>
    tpu.vector_store %arg5[%c0_6, %c0_7], %7 {strides = array<i32>} : memref<8x128xf32, #tpu.memory_space<vmem>>, vector<8x128xf32>,
    return
  }
  func.func @transform_0(%arg0: i32, %arg1: i32) -> (i32, i32) {
    %c0_i32 = arith.constant 0 : i32
    %c0_i32_0 = arith.constant 0 : i32
    return %arg0, %c0_i32 : i32, i32
  }
  func.func @transform_1(%arg0: i32, %arg1: i32) -> (i32, i32) {
    %c0_i32 = arith.constant 0 : i32
    %c0_i32_0 = arith.constant 0 : i32
    return %c0_i32, %arg1 : i32, i32
  }
  func.func @transform_2(%arg0: i32, %arg1: i32) -> (i32, i32) {
    %c0_i32 = arith.constant 0 : i32
    %c0_i32_0 = arith.constant 0 : i32
    return %c0_i32, %arg1 : i32, i32
  }
  func.func @transform_3(%arg0: i32, %arg1: i32) -> (i32, i32) {
    %c0_i32 = arith.constant 0 : i32
    return %arg0, %arg1 : i32, i32
  }
}

</mosaic_0001>

<bundles_post_ra>
// kernel: tpu_custom_call.1
= control target key start
LH: loop header
LB: loop body
LE: loop exit
PB: predicated region body
PF: predicated region fallthrough
CT: control target
= control target key end

     0   :  { %8 = vsyncpa [#allocation3], 0  ;;  %s371_s0 = inlined_call_operand.hbm [shape: bf16[8,128], index: 0, kind: input, shape index: {}]   ;;  %s372_s1 = inlined_call_operand.hbm [shape: bf16[128,128], index: 1, kind: input, shape index: {}]   ;;  %s373_s2 = inlined_call_operand.vmem [shape: f32[1,128], index: 2, kind: input, shape index: {}]   ;;  %s374_s3 = inlined_call_operand.hbm [shape: f32[8,128], index: 3, kind: output, shape index: {}]  }
   0x1   :  { %9 = vsyncpa [#allocation6], 0 }
   0x2   :  { %10 = vsyncpa [#allocation4], 0  ;;  %s298_s12 = smov [#allocation2]   ;;  %s299_s14 = smov [#allocation5]  }
   0x3   :  { %s17_s13 = sshll.u32 %s298_s12, 4  ;;  %s26_s15 = sshll.u32 %s299_s14, 4  ;;  %s18_s13 = int_to_ptr.vmem [resolvable:$true] %s17_s13  ;;  %s325_s15 = int_to_ptr.vmem [resolvable:$true] %s26_s15 }
   0x4   :  { %s226_s18 = scalar_lea.hbm %s371_s0, 64 }
   0x5   :  { %p227_p0 = scmp.ne.s32.totalorder %s371_s0, %s226_s18  ;;  %p230_p1 = scmp.lt.u32.totalorder %s226_s18, %s371_s0 }
   0x7   :  { %p232_p2 = pnand %p230_p1, %p227_p0 }
   0x9   :  { %235 = shalt.err (!%p232_p2)
}
   0xa   :  { %s236_s23 = scalar_lea.vmem %s18_s13, 64  ;;  %p241_p4 = scmp.lt.s32.totalorder %s18_s13, %s18_s13 }
   0xb   :  { %p237_p3 = scmp.ne.s32.totalorder %s18_s13, %s236_s23  ;;  %p242_p5 = scmp.lt.s32.totalorder %s236_s23, %s236_s23 }
   0xd   :  { %p243_p6 = por %p242_p5, %p241_p4 }
   0xf   :  { %p244_p7 = pnand %p243_p6, %p237_p3 }
  0x11   :  { %247 = shalt.err (!%p244_p7)
}
  0x12   :  { %20 = dma.hbm_to_vmem [thread:$0]  %s371_s0, 64, %s18_s13, [#allocation3]  }
  0x13   :  { %s248_s28 = scalar_lea.hbm %s372_s1, 1024 }
  0x14   :  { %p249_p8 = scmp.ne.s32.totalorder %s372_s1, %s248_s28  ;;  %p252_p9 = scmp.lt.u32.totalorder %s248_s28, %s372_s1 }
  0x16   :  { %p254_p10 = pnand %p252_p9, %p249_p8 }
  0x18   :  { %257 = shalt.err (!%p254_p10)
}
  0x19   :  { %s258_s6 = scalar_lea.vmem %s325_s15, 1024  ;;  %p263_p12 = scmp.lt.s32.totalorder %s325_s15, %s325_s15 }
  0x1a   :  { %p259_p11 = scmp.ne.s32.totalorder %s325_s15, %s258_s6  ;;  %p264_p13 = scmp.lt.s32.totalorder %s258_s6, %s258_s6 }
  0x1c   :  { %p265_p0 = por %p264_p13, %p263_p12 }
  0x1e   :  { %p266_p1 = pnand %p265_p0, %p259_p11 }
  0x20   :  { %269 = shalt.err (!%p266_p1)
}
  0x21   :  { %s300_s0 = smov 64   ;;  %s301_s7 = smov 4  }
  0x22   :  { %32 = dma.hbm_to_vmem [thread:$0]  %s372_s1, 1024, %s325_s15, [#allocation6], %s300_s0, %s300_s0, %s301_s7  }
  0x23   :  { %292 = dma.done.wait [#allocation3], 64  }
  0x24   :  { %293 = vsyncadd [#allocation3], 4294967232 }
  0x25   :  { %294 = dma.done.wait [#allocation6], 1024  }
  0x26   :  { %295 = vsyncadd [#allocation6], 4294966272  ;;  %v302_v0 = vmov 0.0   ;;  %vm303_vm0 = vmmov 0   ;;  %v218_v1 = vld [vmem:[#allocation5] sm:$0xff]   ;;  %v219_v2 = vld [vmem:[#allocation5 + $0x8] sm:$0xff]  }
  0x27   :  { %191 = vmatprep.subr.bf16.mxu0 %v302_v0  ;;  %207 = vmatprep.mubr.msk.bf16.mxu0 %vm303_vm0, %v302_v0  ;;  %v220_v3 = vld [vmem:[#allocation5 + $0x10] sm:$0xff]   ;;  %v221_v4 = vld [vmem:[#allocation5 + $0x18] sm:$0xff]   ;;  %v222_v5 = vld [vmem:[#allocation5 + $0x20] sm:$0xff]   ;;  %s304_s11 = smov [#allocation7]  }
  0x28   :  { %192 = vmatpush3.bf16.msra.mxu0 %v218_v1  ;;  %v223_v6 = vld [vmem:[#allocation5 + $0x28] sm:$0xff]   ;;  %v224_v7 = vld [vmem:[#allocation5 + $0x30] sm:$0xff]   ;;  %v225_v8 = vld [vmem:[#allocation5 + $0x38] sm:$0xff]   ;;  %s163_s12 = sshll.u32 %s304_s11, 4  ;;  %s164_s12 = int_to_ptr.vmem [resolvable:$true] %s163_s12 }
  0x29   :  { %193 = vmatprep.subr.bf16.mxu0 %v302_v0  ;;  %v42_v9 = vld [vmem:[#allocation2] sm:$0xf]  ;;  %s270_s13 = scalar_lea.vmem %s164_s12, 128  ;;  %p275_p3 = scmp.lt.s32.totalorder %s164_s12, %s164_s12 }
  0x2a   :  { %v181_v11 = vld [vmem:[%s373_s2] ss:$0 sm:$0xff]  ;;  %p271_p2 = scmp.ne.s32.totalorder %s164_s12, %s270_s13  ;;  %p276_p4 = scmp.lt.s32.totalorder %s270_s13, %s270_s13 }
  0x2c   :  { %194 = vmatpush3.bf16.msra.mxu0 %v219_v2  ;;  %p277_p5 = por %p276_p4, %p275_p3 }
  0x2d   :  { %195 = vmatprep.subr.bf16.mxu0 %v302_v0 }
  0x2e   :  { %p278_p6 = pnand %p277_p5, %p271_p2 }
  0x30   :  { %196 = vmatpush3.bf16.msra.mxu0 %v220_v3 }
  0x31   :  { %197 = vmatprep.subr.bf16.mxu0 %v302_v0 }
  0x34   :  { %198 = vmatpush3.bf16.msra.mxu0 %v221_v4 }
  0x35   :  { %199 = vmatprep.subr.bf16.mxu0 %v302_v0 }
  0x38   :  { %200 = vmatpush3.bf16.msra.mxu0 %v222_v5 }
  0x39   :  { %201 = vmatprep.subr.bf16.mxu0 %v302_v0 }
  0x3c   :  { %202 = vmatpush3.bf16.msra.mxu0 %v223_v6 }
  0x3d   :  { %203 = vmatprep.subr.bf16.mxu0 %v302_v0 }
  0x40   :  { %204 = vmatpush3.bf16.msra.mxu0 %v224_v7 }
  0x41   :  { %205 = vmatprep.subr.bf16.mxu0 %v302_v0 }
  0x44   :  { %206 = vmatpush3.bf16.msra.mxu0 %v225_v8 }
  0x47   :  { %208 = vmatmul.mubr.bf16.vlgmr.msra.gmra.mrb[0].mxu0 %v42_v9 }
 0x11a   :  { %v141_v10 = vpop.f32.mrb[0].mxu0 }
 0x11b   :  { %v148_v12 = vmul.f32 0.17677669, %v141_v10  ;;  %v209_v13 = vpop.f32.mrb[1].mxu0 }
 0x11c   :  { %v144_v14 = vpop.f32.mrb[2].mxu0 }
 0x11d   :  { %v155_v15 = vadd.f32 %v181_v11, %v148_v12  ;;  %v210_v16 = vpop.f32.mrb[3].mxu0 }
 0x11f   :  { %156 = vst [vmem:[#allocation7] sm:$0xff] %v155_v15 }
 0x120   :  { %281 = shalt.err (!%p278_p6)
}
 0x121   :  { %s282_s2 = scalar_lea.hbm %s374_s3, 128 }
 0x122   :  { %p283_p7 = scmp.ne.s32.totalorder %s374_s3, %s282_s2  ;;  %p286_p8 = scmp.lt.u32.totalorder %s282_s2, %s374_s3 }
 0x124   :  { %p288_p9 = pnand %p286_p8, %p283_p7 }
 0x126   :  { %291 = shalt.err (!%p288_p9)
}
 0x127   :  { %166 = dma.vmem_to_hbm [thread:$0]  %s164_s12, 128, %s374_s3, [#allocation4]  }
 0x128   :  { %296 = dma.done.wait [#allocation4], 128  }
 0x129   :  { %297 = vsyncadd [#allocation4], 4294967168 }
 0x12a   :  { %170 = vsyncpa [#allocation3], 1 }
 0x12b   :  { %171 = vsyncpa [#allocation6], 1 }
 0x12c   :  { %172 = vsyncpa [#allocation4], 1 }

</bundles_post_ra>
